<compile_context>
chip_gen: v7x
topology: tpu7x:2x2x1
jax: 0.10.0
libtpu: 0.0.40
codegen_flags: <defaults>
</compile_context>

<pallas_src>
import functools
import math

import jax
import jax.numpy as jnp
from jax.experimental import pallas as pl
from jax.experimental.pallas import tpu as pltpu


def actor_kernel(x_ref, w1_ref, b1_ref, w2_ref, b2_ref, wh_ref, bh_ref,
                 eps_ref, a_ref, logpi_ref, *, action_dim, max_action):
    # x_ref: (obs_dim, TB) bf16 -- batch on the lane axis.
    x = x_ref[...]

    # h = relu(W x + b); first matmul runs the native bf16 MXU path.
    h1 = jnp.dot(w1_ref[...], x, preferred_element_type=jnp.float32) + b1_ref[...]
    h1 = jnp.maximum(h1, 0.0)
    h2 = jnp.dot(w2_ref[...], h1, preferred_element_type=jnp.float32) + b2_ref[...]
    h2 = jnp.maximum(h2, 0.0)

    # Fused mean|log_std head; split along the SUBLANE axis (free).
    head = jnp.dot(wh_ref[...], h2, preferred_element_type=jnp.float32) + bh_ref[...]
    mean = head[:action_dim, :]
    log_std = jnp.clip(head[action_dim:, :], -1.0, 1.0)
    std = jnp.exp(log_std)

    # a = dist.rsample()  (reparameterized: mean + std * eps).
    eps = eps_ref[...]
    a = mean + std * eps

    # Normal log-prob with (a - mean) == std * eps => quadratic term is -eps^2/2.
    log_prob = -0.5 * (eps * eps) - log_std - 0.5 * math.log(2.0 * math.pi)

    # Shared exponential e = exp(-|a|):
    #   softplus(-2a) = max(-2a, 0) + log(1 + e*e)     (exp(-|2a|) == e*e)
    #   sigmoid(a)    = where(a >= 0, 1, e) / (1 + e)
    # (log(1+t) vs log1p only matters when t < 1e-8, where the term itself is
    #  negligible for the tanh-squash correction.)
    e = jnp.exp(-jnp.abs(a))
    softplus_m2a = jnp.maximum(-2.0 * a, 0.0) + jnp.log(1.0 + e * e)
    corr = 2.0 * (math.log(2.0) - a - softplus_m2a)

    # Single fused reduction over the action (sublane) axis -> (1, TB).
    logpi_ref[...] = jnp.sum(log_prob - corr, axis=0, keepdims=True)

    # a = (max_action * sigmoid(a)).clip(0.1, max_action); exact divide.
    sig = jnp.where(a >= 0.0, 1.0, e) / (1.0 + e)
    a_ref[...] = jnp.clip(max_action * sig, 0.1, max_action)


def prepare_params(pt_params):
    """One-time layout/dtype prep.  PyTorch (out, in) weights are already the
    left-multiply layout for the batch-on-lanes kernel (no transposes).  The
    mean and log_std heads are fused along the output (sublane) axis.  w1 is
    stored as bf16 (pairs with the bf16 x stream); biases as (out, 1) f32."""
    p = pt_params
    wh = jnp.concatenate([p["wm"], p["ws"]], axis=0)        # (2A, H2)
    bh = jnp.concatenate([p["bm"], p["bs"]], axis=0)        # (2A,)
    return {
        "w1": p["w1"].astype(jnp.bfloat16),
        "b1": p["b1"].reshape(-1, 1).astype(jnp.float32),
        "w2": p["w2"].astype(jnp.float32),
        "b2": p["b2"].reshape(-1, 1).astype(jnp.float32),
        "wh": wh.astype(jnp.float32),
        "bh": bh.reshape(-1, 1).astype(jnp.float32),
    }


def _pick_batch_tile(padded_batch):
    """padded_batch is a multiple of 128.  Prefer >= 2 grid steps (v7x has two
    TensorCores and "parallel" only shards grid steps) with the largest tile
    <= 512 (512-wide tiles already sit near the HBM roofline)."""
    for t in (512, 256, 128):
        if padded_batch % t == 0 and padded_batch // t >= 2:
            return t
    return min(padded_batch, 512)


def _vmem_limit_bytes(obs_dim, h1, h2, adim, tile_b):
    """Explicit scoped-VMEM budget (v7x physical VMEM is 64 MiB, not 128)."""
    # Double-buffered batched streams: x (bf16), eps (f32), a^T + log_pi (f32).
    streams = 2 * tile_b * (2 * obs_dim + 4 * adim + 4 * (adim + 1))
    # Weights / biases (constant index_map, but reserved double-buffered).
    weights = 2 * (2 * h1 * obs_dim + 4 * (h2 * h1 + 2 * adim * h2)
                   + 4 * (h1 + h2 + 2 * adim))
    # f32 activation tiles the body materializes (h1, h2, head, epilogue temps).
    interm = tile_b * 4 * (h1 + h2 + 12 * 2 * adim)
    return int(min(max(2 * (streams + weights + interm), 32 << 20), 64 << 20))


@functools.partial(jax.jit, static_argnames=("max_action",))
def actor_forward(x, params, eps, max_action):
    """x: (batch, obs_dim) f32, eps: (batch, action_dim) f32 rsample noise,
    params: kernel-layout dict from prepare_params().  Returns (a, log_pi)
    with the module's (batch, action_dim) / (batch, 1) shapes."""
    batch, obs_dim = x.shape
    action_dim = eps.shape[1]
    hidden1 = params["w1"].shape[0]
    hidden2 = params["w2"].shape[0]

    # Pad batch to a multiple of 128 so every block is 128-lane dense, then
    # tile so the grid has >= 2 steps whenever possible (v7x megacore).
    padded = ((batch + 127) // 128) * 128
    tile_b = _pick_batch_tile(padded)
    grid = (padded // tile_b,)

    # Batch-on-lanes inputs; cast + transpose + pad fuse into one XLA op.
    x_t = jnp.pad(x.astype(jnp.bfloat16).T, ((0, 0), (0, padded - batch)))
    eps_t = jnp.pad(eps.astype(jnp.float32).T, ((0, 0), (0, padded - batch)))

    def batched(rows):        # per-grid-step batch tile on the lane axis
        return pl.BlockSpec((rows, tile_b), lambda i: (0, i))

    def replicated(shape):    # weights / biases: same full block every step
        return pl.BlockSpec(shape, lambda i: (0, 0))

    kernel = functools.partial(
        actor_kernel, action_dim=action_dim, max_action=float(max_action))

    a_t, logpi_t = pl.pallas_call(
        kernel,
        out_shape=(
            jax.ShapeDtypeStruct((action_dim, padded), jnp.float32),
            jax.ShapeDtypeStruct((1, padded), jnp.float32),
        ),
        grid=grid,
        in_specs=[
            batched(obs_dim),
            replicated(params["w1"].shape), replicated(params["b1"].shape),
            replicated(params["w2"].shape), replicated(params["b2"].shape),
            replicated(params["wh"].shape), replicated(params["bh"].shape),
            batched(action_dim),
        ],
        out_specs=(batched(action_dim), batched(1)),
        compiler_params=pltpu.CompilerParams(
            dimension_semantics=("parallel",),
            vmem_limit_bytes=_vmem_limit_bytes(
                obs_dim, hidden1, hidden2, action_dim, tile_b)),
    )(x_t, params["w1"], params["b1"], params["w2"], params["b2"],
      params["wh"], params["bh"], eps_t)

    # Back to the module's (batch, ...) layout; strip the batch padding.
    return a_t[:, :batch].T, logpi_t[:, :batch].T


def actor_reference(x, pt_params, eps, max_action):
    """Pure-f32 JAX reference mirroring the PyTorch module (rsample via eps)."""
    p = pt_params
    h1 = jax.nn.relu(x @ p["w1"].T + p["b1"])
    h2 = jax.nn.relu(h1 @ p["w2"].T + p["b2"])
    mean = h2 @ p["wm"].T + p["bm"]
    log_std = jnp.clip(h2 @ p["ws"].T + p["bs"], -1.0, 1.0)
    std = jnp.exp(log_std)
    a = mean + std * eps
    log_prob = (-((a - mean) ** 2) / (2.0 * std * std)
                - log_std - 0.5 * jnp.log(2.0 * jnp.pi))
    log_pi = jnp.sum(log_prob, axis=1, keepdims=True)
    corr = 2.0 * (jnp.log(2.0) - a - jax.nn.softplus(-2.0 * a))
    log_pi = log_pi - jnp.sum(corr, axis=1, keepdims=True)
    a_sq = jnp.clip(max_action * jax.nn.sigmoid(a), 0.1, max_action)
    return a_sq, log_pi


def init_linear(key, out_dim, in_dim):
    """PyTorch-default-style init: U(-1/sqrt(fan_in), 1/sqrt(fan_in))."""
    kw, kb = jax.random.split(key)
    bound = 1.0 / math.sqrt(in_dim)
    w = jax.random.uniform(kw, (out_dim, in_dim), jnp.float32, -bound, bound)
    b = jax.random.uniform(kb, (out_dim,), jnp.float32, -bound, bound)
    return w, b


if __name__ == "__main__":
    # Small, module-consistent shapes.
    batch = 8
    obs_dim = 16        # args.obs_dim_n[agent_id]
    hidden_dim1 = 32    # args.hidden_dim1
    hidden_dim2 = 32    # args.hidden_dim2
    action_dim = 4      # args.action_dim_n[agent_id]
    max_action = 1.0    # args.max_action

    root = jax.random.PRNGKey(0)
    k_x, k_eps, k_x2, k_eps2, k1, k2, k3, k4 = jax.random.split(root, 8)

    pt_params = {}
    pt_params["w1"], pt_params["b1"] = init_linear(k1, hidden_dim1, obs_dim)
    pt_params["w2"], pt_params["b2"] = init_linear(k2, hidden_dim2, hidden_dim1)
    pt_params["wm"], pt_params["bm"] = init_linear(k3, action_dim, hidden_dim2)
    pt_params["ws"], pt_params["bs"] = init_linear(k4, action_dim, hidden_dim2)

    # One-time layout/dtype conversion (no per-call transposes of the weights).
    params = prepare_params(pt_params)

    def run_and_check(x, eps):
        a, log_pi = actor_forward(x, params, eps, max_action=max_action)
        jax.block_until_ready((a, log_pi))
        assert a.shape == (x.shape[0], action_dim)
        assert log_pi.shape == (x.shape[0], 1)
        # Tolerance absorbs the deliberate bf16 quantization of x / w1.
        a_ref, logpi_ref = actor_reference(x, pt_params, eps, max_action)
        assert jnp.allclose(a, a_ref, atol=2e-2, rtol=2e-2)
        assert jnp.allclose(log_pi, logpi_ref, atol=2e-2, rtol=2e-2)

    # Stochastic + log-prob path (deterministic=False, with_logprob=True).
    # TODO(synk): deterministic / with_logprob flags not exposed; pass eps=0
    # for the deterministic action and ignore log_pi for with_logprob=False.
    x = jax.random.normal(k_x, (batch, obs_dim), jnp.float32)
    eps = jax.random.normal(k_eps, (batch, action_dim), jnp.float32)
    run_and_check(x, eps)

    # A batch that is NOT a multiple of 128 exercises the pad-and-strip path
    # and a multi-step (megacore-shardable) grid: 300 -> padded 384, 3 tiles.
    x2 = jax.random.normal(k_x2, (300, obs_dim), jnp.float32)
    eps2 = jax.random.normal(k_eps2, (300, action_dim), jnp.float32)
    run_and_check(x2, eps2)

    print("KERNEL_OK")
</pallas_src>

<mosaic_0001>
module attributes {stable_mosaic.version = 11 : i64} {
  func.func @actor_kernel(%arg0: i32, %arg1: memref<16x128xbf16, #tpu.memory_space<vmem>>, %arg2: memref<32x16xbf16, #tpu.memory_space<vmem>>, %arg3: memref<32x1xf32, #tpu.memory_space<vmem>>, %arg4: memref<32x32xf32, #tpu.memory_space<vmem>>, %arg5: memref<32x1xf32, #tpu.memory_space<vmem>>, %arg6: memref<8x32xf32, #tpu.memory_space<vmem>>, %arg7: memref<8x1xf32, #tpu.memory_space<vmem>>, %arg8: memref<4x128xf32, #tpu.memory_space<vmem>>, %arg9: memref<4x128xf32, #tpu.memory_space<vmem>>, %arg10: memref<1x128xf32, #tpu.memory_space<vmem>>) attributes {dimension_semantics = [#tpu.dimension_semantics<parallel>], iteration_bounds = array<i64: 1>, scalar_prefetch = 0 : i64, scratch_operands = 0 : i64, tpu.core_type = #tpu.core_type<tc>, window_params = [{transform_indices = @transform_0, window_bounds = array<i64: 16, 128>}, {pipeline_mode = #tpu.pipeline_mode<synchronous>, transform_indices = @transform_1, window_bounds = array<i64: 32, 16>}, {pipeline_mode = #tpu.pipeline_mode<synchronous>, transform_indices = @transform_2, window_bounds = array<i64: 32, 1>}, {pipeline_mode = #tpu.pipeline_mode<synchronous>, transform_indices = @transform_3, window_bounds = array<i64: 32, 32>}, {pipeline_mode = #tpu.pipeline_mode<synchronous>, transform_indices = @transform_4, window_bounds = array<i64: 32, 1>}, {pipeline_mode = #tpu.pipeline_mode<synchronous>, transform_indices = @transform_5, window_bounds = array<i64: 8, 32>}, {pipeline_mode = #tpu.pipeline_mode<synchronous>, transform_indices = @transform_6, window_bounds = array<i64: 8, 1>}, {transform_indices = @transform_7, window_bounds = array<i64: 4, 128>}, {transform_indices = @transform_8, window_bounds = array<i64: 4, 128>}, {transform_indices = @transform_9, window_bounds = array<i64: 1, 128>}]} {
    %c0 = arith.constant 0 : index
    %c0_0 = arith.constant 0 : index
    %0 = vector.load %arg1[%c0, %c0_0] : memref<16x128xbf16, #tpu.memory_space<vmem>>, vector<16x128xbf16>
    %c0_1 = arith.constant 0 : index
    %c0_2 = arith.constant 0 : index
    %1 = vector.load %arg2[%c0_1, %c0_2] : memref<32x16xbf16, #tpu.memory_space<vmem>>, vector<32x16xbf16>
    %cst = arith.constant dense<0.000000e+00> : vector<32x128xf32>
    %2 = tpu.matmul %1, %0, %cst {dimension_numbers = #tpu.dot_dimension_numbers<[1], [0], [0], [1], [0, 0, 1, 1], [], []>} : vector<32x16xbf16>, vector<16x128xbf16>, vector<32x128xf32> -> vector<32x128xf32>
    %c0_3 = arith.constant 0 : index
    %c0_4 = arith.constant 0 : index
    %3 = vector.load %arg3[%c0_3, %c0_4] : memref<32x1xf32, #tpu.memory_space<vmem>>, vector<32x1xf32>
    %4 = vector.broadcast %3 : vector<32x1xf32> to vector<32x128xf32>
    %5 = arith.addf %2, %4 : vector<32x128xf32>
    %cst_5 = arith.constant 0.000000e+00 : f32
    %6 = vector.broadcast %cst_5 : f32 to vector<32x128xf32>
    %7 = arith.maximumf %5, %6 : vector<32x128xf32>
    %c0_6 = arith.constant 0 : index
    %c0_7 = arith.constant 0 : index
    %8 = vector.load %arg4[%c0_6, %c0_7] : memref<32x32xf32, #tpu.memory_space<vmem>>, vector<32x32xf32>
    %cst_8 = arith.constant dense<0.000000e+00> : vector<32x128xf32>
    %9 = tpu.matmul %8, %7, %cst_8 {dimension_numbers = #tpu.dot_dimension_numbers<[1], [0], [0], [1], [0, 0, 1, 1], [], []>} : vector<32x32xf32>, vector<32x128xf32>, vector<32x128xf32> -> vector<32x128xf32>
    %c0_9 = arith.constant 0 : index
    %c0_10 = arith.constant 0 : index
    %10 = vector.load %arg5[%c0_9, %c0_10] : memref<32x1xf32, #tpu.memory_space<vmem>>, vector<32x1xf32>
    %11 = vector.broadcast %10 : vector<32x1xf32> to vector<32x128xf32>
    %12 = arith.addf %9, %11 : vector<32x128xf32>
    %cst_11 = arith.constant 0.000000e+00 : f32
    %13 = vector.broadcast %cst_11 : f32 to vector<32x128xf32>
    %14 = arith.maximumf %12, %13 : vector<32x128xf32>
    %c0_12 = arith.constant 0 : index
    %c0_13 = arith.constant 0 : index
    %15 = vector.load %arg6[%c0_12, %c0_13] : memref<8x32xf32, #tpu.memory_space<vmem>>, vector<8x32xf32>
    %cst_14 = arith.constant dense<0.000000e+00> : vector<8x128xf32>
    %16 = tpu.matmul %15, %14, %cst_14 {dimension_numbers = #tpu.dot_dimension_numbers<[1], [0], [0], [1], [0, 0, 1, 1], [], []>} : vector<8x32xf32>, vector<32x128xf32>, vector<8x128xf32> -> vector<8x128xf32>
    %c0_15 = arith.constant 0 : index
    %c0_16 = arith.constant 0 : index
    %17 = vector.load %arg7[%c0_15, %c0_16] : memref<8x1xf32, #tpu.memory_space<vmem>>, vector<8x1xf32>
    %18 = vector.broadcast %17 : vector<8x1xf32> to vector<8x128xf32>
    %19 = arith.addf %16, %18 : vector<8x128xf32>
    %20 = vector.extract_strided_slice %19 {offsets = [0, 0], sizes = [4, 128], strides = [1, 1]} : vector<8x128xf32> to vector<4x128xf32>
    %21 = vector.extract_strided_slice %19 {offsets = [4, 0], sizes = [4, 128], strides = [1, 1]} : vector<8x128xf32> to vector<4x128xf32>
    %cst_17 = arith.constant -1.000000e+00 : f32
    %cst_18 = arith.constant 1.000000e+00 : f32
    %22 = vector.broadcast %cst_17 : f32 to vector<4x128xf32>
    %23 = arith.maximumf %22, %21 : vector<4x128xf32>
    %24 = vector.broadcast %cst_18 : f32 to vector<4x128xf32>
    %25 = arith.minimumf %24, %23 : vector<4x128xf32>
    %26 = math.exp %25 : vector<4x128xf32>
    %c0_19 = arith.constant 0 : index
    %c0_20 = arith.constant 0 : index
    %27 = vector.load %arg8[%c0_19, %c0_20] : memref<4x128xf32, #tpu.memory_space<vmem>>, vector<4x128xf32>
    %28 = arith.mulf %26, %27 : vector<4x128xf32>
    %29 = arith.addf %20, %28 : vector<4x128xf32>
    %30 = arith.mulf %27, %27 : vector<4x128xf32>
    %cst_21 = arith.constant -5.000000e-01 : f32
    %31 = vector.broadcast %cst_21 : f32 to vector<4x128xf32>
    %32 = arith.mulf %31, %30 : vector<4x128xf32>
    %33 = arith.subf %32, %25 : vector<4x128xf32>
    %cst_22 = arith.constant 0.918938517 : f32
    %34 = vector.broadcast %cst_22 : f32 to vector<4x128xf32>
    %35 = arith.subf %33, %34 : vector<4x128xf32>
    %36 = math.absf %29 : vector<4x128xf32>
    %cst_23 = arith.constant 0.000000e+00 : f32
    %37 = vector.broadcast %cst_23 : f32 to vector<4x128xf32>
    %38 = arith.subf %37, %36 : vector<4x128xf32>
    %39 = math.exp %38 : vector<4x128xf32>
    %cst_24 = arith.constant -2.000000e+00 : f32
    %40 = vector.broadcast %cst_24 : f32 to vector<4x128xf32>
    %41 = arith.mulf %40, %29 : vector<4x128xf32>
    %cst_25 = arith.constant 0.000000e+00 : f32
    %42 = vector.broadcast %cst_25 : f32 to vector<4x128xf32>
    %43 = arith.maximumf %41, %42 : vector<4x128xf32>
    %44 = arith.mulf %39, %39 : vector<4x128xf32>
    %cst_26 = arith.constant 1.000000e+00 : f32
    %45 = vector.broadcast %cst_26 : f32 to vector<4x128xf32>
    %46 = arith.addf %45, %44 : vector<4x128xf32>
    %47 = math.log %46 : vector<4x128xf32>
    %48 = arith.addf %43, %47 : vector<4x128xf32>
    %cst_27 = arith.constant 0.693147182 : f32
    %49 = vector.broadcast %cst_27 : f32 to vector<4x128xf32>
    %50 = arith.subf %49, %29 : vector<4x128xf32>
    %51 = arith.subf %50, %48 : vector<4x128xf32>
    %cst_28 = arith.constant 2.000000e+00 : f32
    %52 = vector.broadcast %cst_28 : f32 to vector<4x128xf32>
    %53 = arith.mulf %52, %51 : vector<4x128xf32>
    %54 = arith.subf %35, %53 : vector<4x128xf32>
    %cst_29 = arith.constant dense<0.000000e+00> : vector<128xf32>
    %55 = vector.multi_reduction <add>, %54, %cst_29 [0] : vector<4x128xf32> to vector<128xf32>
    %56 = vector.shape_cast %55 : vector<128xf32> to vector<1x128xf32>
    %c0_30 = arith.constant 0 : index
    %c0_31 = arith.constant 0 : index
    %57 = vector.load %arg10[%c0_30, %c0_31] : memref<1x128xf32, #tpu.memory_space<vmem>>, vector<1x128xf32>
    tpu.vector_store %arg10[%c0_30, %c0_31], %56 {strides = array<i32>} : memref<1x128xf32, #tpu.memory_space<vmem>>, vector<1x128xf32>,
    %cst_32 = arith.constant 0.000000e+00 : f32
    %58 = vector.broadcast %cst_32 : f32 to vector<4x128xf32>
    %59 = arith.cmpf oge, %29, %58 : vector<4x128xf32>
    %cst_33 = arith.constant 1.000000e+00 : f32
    %60 = vector.broadcast %cst_33 : f32 to vector<4x128xf32>
    %61 = arith.select %59, %60, %39 : vector<4x128xi1>, vector<4x128xf32>
    %cst_34 = arith.constant 1.000000e+00 : f32
    %62 = vector.broadcast %cst_34 : f32 to vector<4x128xf32>
    %63 = arith.addf %62, %39 : vector<4x128xf32>
    %64 = arith.divf %61, %63 : vector<4x128xf32>
    %cst_35 = arith.constant 1.000000e+00 : f32
    %65 = vector.broadcast %cst_35 : f32 to vector<4x128xf32>
    %66 = arith.mulf %65, %64 : vector<4x128xf32>
    %cst_36 = arith.constant 1.000000e-01 : f32
    %cst_37 = arith.constant 1.000000e+00 : f32
    %67 = vector.broadcast %cst_36 : f32 to vector<4x128xf32>
    %68 = arith.maximumf %67, %66 : vector<4x128xf32>
    %69 = vector.broadcast %cst_37 : f32 to vector<4x128xf32>
    %70 = arith.minimumf %69, %68 : vector<4x128xf32>
    %c0_38 = arith.constant 0 : index
    %c0_39 = arith.constant 0 : index
    %71 = vector.load %arg9[%c0_38, %c0_39] : memref<4x128xf32, #tpu.memory_space<vmem>>, vector<4x128xf32>
    tpu.vector_store %arg9[%c0_38, %c0_39], %70 {strides = array<i32>} : memref<4x128xf32, #tpu.memory_space<vmem>>, vector<4x128xf32>,
    return
  }
  func.func @transform_0(%arg0: i32) -> (i32, i32) {
    %c0_i32 = arith.constant 0 : i32
    %c0_i32_0 = arith.constant 0 : i32
    return %c0_i32, %arg0 : i32, i32
  }
  func.func @transform_1(%arg0: i32) -> (i32, i32) {
    %c0_i32 = arith.constant 0 : i32
    %c0_i32_0 = arith.constant 0 : i32
    %c0_i32_1 = arith.constant 0 : i32
    return %c0_i32, %c0_i32_0 : i32, i32
  }
  func.func @transform_2(%arg0: i32) -> (i32, i32) {
    %c0_i32 = arith.constant 0 : i32
    %c0_i32_0 = arith.constant 0 : i32
    %c0_i32_1 = arith.constant 0 : i32
    return %c0_i32, %c0_i32_0 : i32, i32
  }
  func.func @transform_3(%arg0: i32) -> (i32, i32) {
    %c0_i32 = arith.constant 0 : i32
    %c0_i32_0 = arith.constant 0 : i32
    %c0_i32_1 = arith.constant 0 : i32
    return %c0_i32, %c0_i32_0 : i32, i32
  }
  func.func @transform_4(%arg0: i32) -> (i32, i32) {
    %c0_i32 = arith.constant 0 : i32
    %c0_i32_0 = arith.constant 0 : i32
    %c0_i32_1 = arith.constant 0 : i32
    return %c0_i32, %c0_i32_0 : i32, i32
  }
  func.func @transform_5(%arg0: i32) -> (i32, i32) {
    %c0_i32 = arith.constant 0 : i32
    %c0_i32_0 = arith.constant 0 : i32
    %c0_i32_1 = arith.constant 0 : i32
    return %c0_i32, %c0_i32_0 : i32, i32
  }
  func.func @transform_6(%arg0: i32) -> (i32, i32) {
    %c0_i32 = arith.constant 0 : i32
    %c0_i32_0 = arith.constant 0 : i32
    %c0_i32_1 = arith.constant 0 : i32
    return %c0_i32, %c0_i32_0 : i32, i32
  }
  func.func @transform_7(%arg0: i32) -> (i32, i32) {
    %c0_i32 = arith.constant 0 : i32
    %c0_i32_0 = arith.constant 0 : i32
    return %c0_i32, %arg0 : i32, i32
  }
  func.func @transform_8(%arg0: i32) -> (i32, i32) {
    %c0_i32 = arith.constant 0 : i32
    %c0_i32_0 = arith.constant 0 : i32
    return %c0_i32, %arg0 : i32, i32
  }
  func.func @transform_9(%arg0: i32) -> (i32, i32) {
    %c0_i32 = arith.constant 0 : i32
    %c0_i32_0 = arith.constant 0 : i32
    return %c0_i32, %arg0 : i32, i32
  }
}

</mosaic_0001>

<bundles_post_ra>
// kernel: actor_forward.1
= control target key start
LH: loop header
LB: loop body
LE: loop exit
PB: predicated region body
PF: predicated region fallthrough
CT: control target
= control target key end

     0   :  { %vm78_vm0 = vcmask 130048   ;;  %v498_v1 = vmov 0   ;;  %vm166_vm1 = vcmask 261120   ;;  %v499_v35 = vmov 0.0|0.0   ;;  %s619_s0 = inlined_call_operand.vmem [shape: bf16[16,128], index: 0, kind: input, shape index: {}]   ;;  %s620_s1 = inlined_call_operand.vmem [shape: bf16[32,16], index: 1, kind: input, shape index: {}]   ;;  %s621_s2 = inlined_call_operand.vmem [shape: f32[32,1], index: 2, kind: input, shape index: {}]   ;;  %s622_s4 = inlined_call_operand.vmem [shape: f32[32,1], index: 4, kind: input, shape index: {}]   ;;  %s623_s6 = inlined_call_operand.vmem [shape: f32[8,1], index: 6, kind: input, shape index: {}]   ;;  %s624_s3 = inlined_call_operand.vmem [shape: f32[32,32], index: 3, kind: input, shape index: {}]   ;;  %s625_s5 = inlined_call_operand.vmem [shape: f32[8,32], index: 5, kind: input, shape index: {}]   ;;  %s626_s7 = inlined_call_operand.vmem [shape: f32[4,128], index: 7, kind: input, shape index: {}]   ;;  %s627_s8 = inlined_call_operand.vmem [shape: f32[4,128], index: 8, kind: output, shape index: {0}]   ;;  %s628_s9 = inlined_call_operand.vmem [shape: f32[1,128], index: 9, kind: output, shape index: {1}]  }
   0x1   :  { %v487_v0 = vld [vmem:[%s619_s0] sm:$0xff]   ;;  %485 = vset.pattern.permute.xlu0 %v498_v1  ;;  %486 = vset.pattern.permute.xlu1 %v498_v1  ;;  %v489_v3 = vld [vmem:[%s620_s1 + $0x8] sm:$0xff]   ;;  %v40_v5 = vld [vmem:[%s621_s2 + $0x10] sm:$0xff]  ;;  %vm500_vm2 = vmmov 0   ;;  %v501_v36 = vmov 0.0   ;;  %vm383_vm4 = vcmask 1043456  }
   0x2   :  { %v488_v2 = vld [vmem:[%s620_s1] sm:$0xff]   ;;  %436 = vmatprep.subr.bf16.mxu0 %v487_v0  ;;  %54 = vperm.xlu1 %486, %v40_v5   ;;  %v39_v6 = vld [vmem:[%s621_s2 + $0x8] sm:$0xff]  ;;  %v41_v7 = vld [vmem:[%s621_s2 + $0x18] sm:$0xff] }
   0x3   :  { %437 = vmatpush3.bf16.msra.mxu0 %v487_v0  ;;  %438 = vmatprep.mubr.msk.bf16.mxu0 %vm78_vm0, %v488_v2  ;;  %v38_v4 = vld [vmem:[%s621_s2] sm:$0xff]  ;;  %v143_v9 = vld [vmem:[%s622_s4 + $0x8] sm:$0xff]  ;;  %v144_v10 = vld [vmem:[%s622_s4 + $0x10] sm:$0xff] }
   0x4   :  { %44 = vperm.xlu0 %485, %v38_v4   ;;  %v142_v8 = vld [vmem:[%s622_s4] sm:$0xff]  ;;  %v145_v11 = vld [vmem:[%s622_s4 + $0x18] sm:$0xff]  ;;  %v139_v32 = vld [vmem:[%s624_s3 + $0x8] sm:$0xff]  ;;  %475 = vmatprep.subr.bf16.mxu0 %v499_v35 }
   0x5   :  { %v269_v12 = vld [vmem:[%s623_s6] sm:$0xff]  ;;  %v140_v33 = vld [vmem:[%s624_s3 + $0x10] sm:$0xff]  ;;  %v141_v34 = vld [vmem:[%s624_s3 + $0x18] sm:$0xff] }
   0x6   :  { %439 = vmatmul.mubr.msk.bf16.vlgmr.msra.gmra.mrb[0].mxu0 %vm78_vm0, %v489_v3  ;;  %59 = vperm.xlu1 %486, %v41_v7   ;;  %v138_v13 = vld [vmem:[%s624_s3] sm:$0xff] }
   0x7   :  { %450 = vmatprep.mubr.msk.f32.mxu1 %vm166_vm1, %v138_v13  ;;  %464 = vmatprep.mubr.msk.f32.mxu0 %vm500_vm2, %v501_v36  ;;  %v268_v55 = vld [vmem:[%s625_s5] sm:$0xff] }
   0x8   :  { %49 = vperm.xlu0 %485, %v39_v6   ;;  %v352_v62 = vld [vmem:[%s626_s7] sm:$0xf] }
   0x9   :  { %v354_v63 = vrot.slane %v352_v62, 4 }
   0xa   :  { %153 = vperm.xlu1 %486, %v143_v9  }
   0xc   :  { %148 = vperm.xlu0 %485, %v142_v8  }
   0xe   :  { %163 = vperm.xlu1 %486, %v145_v11   ;;  %v361_v11 = vmul.f32 %v352_v62, %v352_v62 }
  0x10   :  { %158 = vperm.xlu0 %485, %v144_v10  }
  0x14   :  { %272 = vperm.xlu0 %485, %v269_v12  }
  0x81   :  { %v55_v14 = vpop.permute.xlu1 %54 }
  0x83   :  { %v45_v15 = vpop.permute.xlu0 %44 }
  0x85   :  { %v60_v19 = vpop.permute.xlu1 %59 }
  0x87   :  { %v50_v22 = vpop.permute.xlu0 %49 }
  0x89   :  { %v154_v37 = vpop.permute.xlu1 %153 }
  0x8b   :  { %v149_v38 = vpop.permute.xlu0 %148 }
  0x8d   :  { %v164_v44 = vpop.permute.xlu1 %163 }
  0x8f   :  { %v159_v47 = vpop.permute.xlu0 %158 }
  0x93   :  { %v273_v56 = vpop.permute.xlu0 %272 }
  0xd9   :  { %v440_v16 = vpop.f32.mrb[0].mxu0 }
  0xda   :  { %v128_v17 = vadd.f32 %v440_v16, %v55_v14  ;;  %v119_v18 = vpop.f32.mrb[1].mxu0 }
  0xdb   :  { %v120_v20 = vadd.f32 %v119_v18, %v45_v15  ;;  %v441_v21 = vpop.f32.mrb[2].mxu0  ;;  %v362_v15 = vmul.f32 -0.5, %v361_v11 }
  0xdc   :  { %v131_v23 = vadd.f32 %v441_v21, %v60_v19  ;;  %v122_v24 = vpop.f32.mrb[3].mxu0  ;;  %v136_v26 = vmax.f32 %v128_v17, 0.0 }
  0xdd   :  { %v123_v25 = vadd.f32 %v122_v24, %v50_v22  ;;  %v134_v28 = vmax.f32 %v120_v20, 0.0 }
  0xde   :  { %v137_v27 = vmax.f32 %v131_v23, 0.0 }
  0xdf   :  { %v135_v29 = vmax.f32 %v123_v25, 0.0 }
  0xe0   :  { %v471_v30 = vpack.c.bf16 %v137_v27, %v136_v26 }
  0xe1   :  { %v467_v31 = vpack.c.bf16 %v135_v29, %v134_v28 }
  0xe3   :  { %468 = vmatprep.subr.bf16.mxu1 %v467_v31 }
  0xe4   :  { %470 = vmatpush3.bf16.msra.mxu1 %v467_v31 }
  0xe5   :  { %472 = vmatprep.subr.bf16.mxu1 %v471_v30 }
  0xe8   :  { %474 = vmatpush3.bf16.msra.mxu1 %v471_v30 }
  0xeb   :  { %451 = vmatmul.mubr.msk.f32.vlgmr.msra.gmra.mrb[0].mxu1 %vm166_vm1, %v139_v32 }
  0xec   :  { %453 = vmatprep.mubr.msk.f32.mxu1 %vm166_vm1, %v140_v33 }
  0xef   :  { %454 = vmatmul.mubr.msk.f32.gmra.mrb[2].mxu1 %vm166_vm1, %v141_v34 }
 0x1be   :  { %v452_v39 = vpop.f32.mrb[0].mxu1 }
 0x1bf   :  { %v251_v40 = vadd.f32 %v452_v39, %v154_v37  ;;  %v245_v41 = vpop.f32.mrb[1].mxu1 }
 0x1c0   :  { %v246_v42 = vadd.f32 %v245_v41, %v149_v38 }
 0x1c1   :  { %v265_v43 = vmax.f32 %v251_v40, 0.0 }
 0x1c2   :  { %v264_v45 = vmax.f32 %v246_v42, 0.0  ;;  %v455_v46 = vpop.f32.mrb[2].mxu1 }
 0x1c3   :  { %v261_v48 = vadd.f32 %v455_v46, %v164_v44  ;;  %v255_v49 = vpop.f32.mrb[3].mxu1 }
 0x1c4   :  { %v476_v50 = vpack.c.bf16 %v265_v43, %v264_v45  ;;  %v256_v51 = vadd.f32 %v255_v49, %v159_v47 }
 0x1c5   :  { %v267_v52 = vmax.f32 %v261_v48, 0.0 }
 0x1c6   :  { %v266_v53 = vmax.f32 %v256_v51, 0.0  ;;  %477 = vmatpush3.bf16.msra.mxu0 %v476_v50 }
 0x1c7   :  { %478 = vmatprep.subr.bf16.mxu0 %v499_v35 }
 0x1c8   :  { %v479_v54 = vpack.c.bf16 %v267_v52, %v266_v53 }
 0x1ca   :  { %480 = vmatpush3.bf16.msra.mxu0 %v479_v54 }
 0x1cd   :  { %465 = vmatmul.mubr.msk.f32.vlgmr.msra.gmra.mrb[4].mxu0 %vm166_vm1, %v268_v55 }
 0x2a0   :  { %v344_v57 = vpop.f32.mrb[4].mxu0 }
 0x2a1   :  { %v345_v58 = vadd.f32 %v344_v57, %v273_v56  ;;  %v466_v59 = vpop.f32.mrb[5].mxu0 }
 0x2a3   :  { %v418_v60 = vclamps-f32 %v345_v58, 1.0 }
 0x2a5   :  { %v350_v61 = vmul.f32 1.442695, %v418_v60  ;;  %v364_v16 = vrot.slane %v418_v60, 4 }
 0x2a7   :  { %490 = vpow2.f32 %v350_v61  ;;  %v366_v22 = vsub.f32 %v362_v15, %v364_v16 }
 0x2a9   :  { %v419_v27 = vadd.f32 -0.9189385, %v366_v22 }
 0x2b1   :  { %v491_v0 = vpop.eup %490 }
 0x2b2   :  { %v356_v1 = vmul.f32 %v491_v0, %v354_v63 }
 0x2b4   :  { %v358_v2 = vrot.slane %v356_v1, 4 }
 0x2b6   :  { %v360_v3 = vadd.f32 %v358_v2, %v345_v58 }
 0x2b8   :  { %v368_v4 = vand.u32 2147483647, %v360_v3  ;;  %v372_v12 = vmul.f32 -2.0, %v360_v3  ;;  %vm392_vm3 = vcmp.ge.f32.partialorder %v360_v3, 0.0  ;;  %v379_v24 = vsub.f32 0.6931472, %v360_v3 }
 0x2ba   :  { %v369_v5 = vsub.f32 0.0, %v368_v4  ;;  %v373_v19 = vmax.f32 %v372_v12, 0.0 }
 0x2bc   :  { %v370_v6 = vmul.f32 1.442695, %v369_v5 }
 0x2be   :  { %492 = vpow2.f32 %v370_v6 }
 0x2c8   :  { %v493_v7 = vpop.eup %492 }
 0x2c9   :  { %v374_v8 = vmul.f32 %v493_v7, %v493_v7  ;;  %v394_v9 = vadd.f32 1.0, %v493_v7  ;;  %v393_v14 = vsel %vm392_vm3, 1.0, %v493_v7 }
 0x2cb   :  { %v375_v10 = vadd.f32 1.0, %v374_v8  ;;  %494 = vrcp.f32 %v394_v9 }
 0x2cd   :  { %496 = vlog2.f32 %v375_v10 }
 0x2d5   :  { %v495_v13 = vpop.eup %494 }
 0x2d6   :  { %v396_v17 = vmul.f32 %v495_v13, %v393_v14 }
 0x2d7   :  { %v497_v18 = vpop.eup %496 }
 0x2d8   :  { %v377_v20 = vmul.f32 0.6931472, %v497_v18  ;;  %v397_v21 = vmax.f32 %v396_v17, 0.1 }
 0x2da   :  { %v378_v23 = vadd.f32 %v377_v20, %v373_v19  ;;  %v398_v25 = vmin.f32 %v397_v21, 1.0 }
 0x2dc   :  { %v380_v26 = vsub.f32 %v379_v24, %v378_v23  ;;  %399 = vst [vmem:[%s627_s8] sm:$0xf] %v398_v25 }
 0x2de   :  { %v381_v28 = vmul.f32 2.0, %v380_v26 }
 0x2e0   :  { %v382_v29 = vsub.f32 %v419_v27, %v381_v28 }
 0x2e2   :  { %v384_v30 = vsel %vm383_vm4, %v382_v29, 0.0 }
 0x2e3   :  { %v385_v31 = vrot.slane %v384_v30, 4 }
 0x2e5   :  { %v386_v32 = vadd.f32 %v385_v31, %v384_v30 }
 0x2e7   :  { %v387_v33 = vrot.slane %v386_v32, 2 }
 0x2e9   :  { %v388_v34 = vadd.f32 %v387_v33, %v386_v32 }
 0x2eb   :  { %v389_v35 = vrot.slane %v388_v34, 1 }
 0x2ed   :  { %v390_v36 = vadd.f32 %v389_v35, %v388_v34 }
 0x2ef   :  { %391 = vst [vmem:[%s628_s9] sm:$0x1] %v390_v36 }

</bundles_post_ra>
